<compile_context>
chip_gen: v7x
topology: tpu7x:2x2x1
jax: 0.10.0
libtpu: 0.0.40
codegen_flags: <defaults>
</compile_context>

<pallas_src>
import functools

import jax
import jax.numpy as jnp
from jax import lax
from jax.experimental import pallas as pl
from jax.experimental.pallas import tpu as pltpu

LANE = 128


def _round_up(x, m):
    return (x + m - 1) // m * m


def reverb_kernel(imp_ref, x_ref, halo_ref, out_ref, *, ir):
    # imp_ref:  (ir,)  SMEM  precomputed impulse taps (imp[0] == 1 exactly)
    # x_ref:    (SUB, CH)    packed signal rows (one time chunk per row, lanes dense)
    # halo_ref: (SUB, 128)   last 128 samples of the previous chunk of the same
    #                        signal row (zeros at each signal's first chunk)
    # out_ref:  (SUB, CH)
    sub, _ = out_ref.shape
    halo_w = halo_ref.shape[1]  # 128

    def process_rows(off):
        xc = x_ref[pl.ds(off, 8), :]                        # (8, CH)
        hc = halo_ref[pl.ds(off, 8), :]                     # (8, 128)
        comb = jnp.concatenate([hc, xc], axis=1)            # (8, 128 + CH)
        # tap 0: impulse[0] == 1 exactly -> no multiply needed.
        acc = comb[:, halo_w:]
        for k in range(1, ir):                              # static unroll, ir is small
            # rolled[:, 128 + j] == comb[:, 128 + j - k]:
            #   j >= k -> current chunk sample  x[j - k]
            #   j <  k -> previous-chunk halo sample (causal boundary: zeros)
            rolled = pltpu.roll(comb, shift=k, axis=1)
            acc = acc + imp_ref[k] * rolled[:, halo_w:]
        out_ref[pl.ds(off, 8), :] = acc

    if sub == 8:
        process_rows(0)
    else:
        # Bound live vreg ranges: one 8-sublane slab at a time.
        @pl.loop(0, sub // 8)
        def _(s):
            process_rows(pl.multiple_of(s * 8, 8))


def _choose_layout(B, lenx):
    """Pick chunk (lane) width CH and sublane tile SUB for the packed layout."""
    lenx_p128 = _round_up(lenx, LANE)
    ch = None
    fallback = None
    for cand in (1024, 512, 256, 128):
        if cand > lenx_p128:                   # don't pad time just to enlarge CH
            continue
        if fallback is None:
            fallback = cand
        rows_c = B * (_round_up(lenx, cand) // cand)
        # Prefer >= 2 grid steps: v7x megacore (2 TCs) + BlockSpec double-buffering.
        if _round_up(rows_c, 8) // 8 >= 2:
            ch = cand
            break
    if ch is None:
        ch = fallback if fallback is not None else LANE
    Lp = _round_up(lenx, ch)
    n_chunks = Lp // ch
    rows = B * n_chunks
    sub = 8
    for cand in (64, 32, 16):                  # larger per-step volume when rows allow
        rp = _round_up(rows, cand)
        if rp // cand >= 4 and (rp - rows) * 8 <= rows:   # keep >=4 steps, <=12.5% pad
            sub = cand
            break
    rows_p = _round_up(rows, sub)
    return ch, Lp, n_chunks, rows, sub, rows_p


def reverb_forward(x, noise, decay, wet, t):
    """x: (B, lenx, 1); noise: (length, 1); decay, wet: scalars; t: (1, length, 1)."""
    B, lenx, _ = x.shape
    length = noise.shape[0]
    assert length <= lenx
    # The halo covers at most (length - 1) samples; a single 128-lane halo block
    # is supported.  TODO(synk): multi-block halo (or FFT path) for longer IRs.
    assert length - 1 <= LANE

    # ---- impulse response: grid-invariant, built once on the host side ------
    dec_rate = jax.nn.softplus(-jnp.asarray(decay, jnp.float32))
    gain = jax.nn.sigmoid(jnp.asarray(wet, jnp.float32))
    imp = (noise[:, 0].astype(jnp.float32)
           * jnp.exp(-dec_rate * t[0, :, 0].astype(jnp.float32) * 500.0)
           * gain)
    imp = imp.at[0].set(1.0)                               # impulse[0] = 1 (exact)

    # ---- packed (batch x chunk) layout ---------------------------------------
    CH, Lp, n_chunks, rows, SUB, rows_p = _choose_layout(B, lenx)

    x2d = jnp.pad(x[..., 0].astype(jnp.float32), ((0, 0), (0, Lp - lenx)))   # (B, Lp)
    x_rows = x2d.reshape(rows, CH)                                           # (rows, CH)

    # Narrow causal halo: last 128 samples of the previous chunk of the same
    # signal; zero at each signal's first chunk (causal boundary).
    tails = x_rows[:, CH - LANE:]                                            # (rows, 128)
    halo = jnp.concatenate([jnp.zeros((1, LANE), jnp.float32), tails[:-1]], axis=0)
    first_chunk = (jnp.arange(rows) % n_chunks) == 0
    halo = jnp.where(first_chunk[:, None], jnp.float32(0.0), halo)

    x_rows = jnp.pad(x_rows, ((0, rows_p - rows), (0, 0)))
    halo = jnp.pad(halo, ((0, rows_p - rows), (0, 0)))

    grid = (rows_p // SUB,)
    # VMEM budget: 2 buffers x (x tile + halo tile + out tile) + headroom; stays
    # far below the v7x 64 MiB physical / 32 MiB default-scoped VMEM.
    step_bytes = SUB * (2 * CH + LANE) * 4
    vmem_limit = int(min(max(8 * step_bytes, 16 << 20), 32 << 20))

    out_rows = pl.pallas_call(
        functools.partial(reverb_kernel, ir=length),
        out_shape=jax.ShapeDtypeStruct((rows_p, CH), jnp.float32),
        grid=grid,
        in_specs=[
            pl.BlockSpec(memory_space=pltpu.MemorySpace.SMEM),   # impulse taps (scalars)
            pl.BlockSpec((SUB, CH), lambda r: (r, 0)),           # packed signal rows
            pl.BlockSpec((SUB, LANE), lambda r: (r, 0)),         # narrow halo rows
        ],
        out_specs=pl.BlockSpec((SUB, CH), lambda r: (r, 0)),
        compiler_params=pltpu.CompilerParams(
            dimension_semantics=("parallel",),
            vmem_limit_bytes=vmem_limit),
    )(imp, x_rows, halo)

    out2d = out_rows[:rows].reshape(B, Lp)
    return out2d[:, :lenx, None]                                 # (B, lenx, 1)


def reverb_reference(x, noise, decay, wet, t):
    """Pure-JAX mirror of the PyTorch forward (FFT-based), for verification."""
    B, lenx, _ = x.shape
    length = noise.shape[0]
    dec = jax.nn.softplus(-decay)
    imp = noise[None, :, :] * jnp.exp(-dec * t * 500.0)          # (1, length, 1)
    imp = imp * jax.nn.sigmoid(wet)
    imp = imp.at[:, 0].set(1.0)
    imp = jnp.pad(imp, ((0, 0), (0, lenx - length), (0, 0)))     # (1, lenx, 1)

    sig = x[..., 0]                                              # (B, lenx)
    ker = imp[..., 0]                                            # (1, lenx)
    sig_p = jnp.pad(sig, ((0, 0), (0, lenx)))
    ker_p = jnp.pad(ker, ((0, 0), (lenx, 0)))
    out = jnp.fft.irfft(jnp.fft.rfft(sig_p) * jnp.fft.rfft(ker_p), n=2 * lenx)
    out = out[..., lenx:]
    return out[..., None]


if __name__ == "__main__":
    def run_case(case_key, B, lenx, length, sr):
        kx, kn = jax.random.split(case_key)
        x = jax.random.normal(kx, (B, lenx, 1), dtype=jnp.float32)
        noise = jax.random.uniform(kn, (length, 1), dtype=jnp.float32) * 2.0 - 1.0
        decay = jnp.float32(5.0)     # initial_decay
        wet = jnp.float32(0.0)       # initial_wet
        t = (jnp.arange(length, dtype=jnp.float32) / sr).reshape(1, length, 1)

        y = jax.block_until_ready(reverb_forward(x, noise, decay, wet, t))
        y_ref = reverb_reference(x, noise, decay, wet, t)
        assert y.shape == (B, lenx, 1)
        assert jnp.allclose(y, y_ref, atol=1e-3, rtol=1e-3), "mismatch vs FFT reference"

    key = jax.random.PRNGKey(0)
    k1, k2 = jax.random.split(key)
    # Module-scale test: B=2, lenx=1000, 16-tap IR (packed rows, CH=128, grid=(2,)).
    run_case(k1, B=2, lenx=1000, length=16, sr=16000)
    # Larger-tile path: exercises SUB=16 / CH=1024 / pl.loop sublane slabs, grid=(4,).
    run_case(k2, B=4, lenx=16384, length=16, sr=16000)

    print("KERNEL_OK")
</pallas_src>

<mosaic_0001>
module attributes {stable_mosaic.version = 11 : i64} {
  func.func @reverb_kernel(%arg0: i32, %arg1: memref<16xf32, #tpu.memory_space<smem>>, %arg2: memref<8x128xf32, #tpu.memory_space<vmem>>, %arg3: memref<8x128xf32, #tpu.memory_space<vmem>>, %arg4: memref<8x128xf32, #tpu.memory_space<vmem>>) attributes {dimension_semantics = [#tpu.dimension_semantics<parallel>], iteration_bounds = array<i64: 2>, scalar_prefetch = 0 : i64, scratch_operands = 0 : i64, tpu.core_type = #tpu.core_type<tc>, window_params = [{transform_indices = @transform_0, window_bounds = array<i64: 16>}, {transform_indices = @transform_1, window_bounds = array<i64: 8, 128>}, {transform_indices = @transform_2, window_bounds = array<i64: 8, 128>}, {transform_indices = @transform_3, window_bounds = array<i64: 8, 128>}]} {
    %c0 = arith.constant 0 : index
    %c0_0 = arith.constant 0 : index
    %0 = vector.load %arg2[%c0, %c0_0] : memref<8x128xf32, #tpu.memory_space<vmem>>, vector<8x128xf32>
    %c0_1 = arith.constant 0 : index
    %c0_2 = arith.constant 0 : index
    %1 = vector.load %arg3[%c0_1, %c0_2] : memref<8x128xf32, #tpu.memory_space<vmem>>, vector<8x128xf32>
    %2 = tpu.concatenate %1, %0 in 1 : vector<8x128xf32>, vector<8x128xf32> -> vector<8x256xf32>
    %3 = vector.extract_strided_slice %2 {offsets = [0, 128], sizes = [8, 128], strides = [1, 1]} : vector<8x256xf32> to vector<8x128xf32>
    %c1_i32 = arith.constant 1 : i32
    %4 = tpu.dynamic_rotate %2 by %c1_i32 dim 1 : vector<8x256xf32>, i32 -> vector<8x256xf32>
    %c1 = arith.constant 1 : index
    %5 = memref.load %arg1[%c1] : memref<16xf32, #tpu.memory_space<smem>>
    %6 = vector.extract_strided_slice %4 {offsets = [0, 128], sizes = [8, 128], strides = [1, 1]} : vector<8x256xf32> to vector<8x128xf32>
    %7 = vector.broadcast %5 : f32 to vector<8x128xf32>
    %8 = arith.mulf %7, %6 : vector<8x128xf32>
    %9 = arith.addf %3, %8 : vector<8x128xf32>
    %c2_i32 = arith.constant 2 : i32
    %10 = tpu.dynamic_rotate %2 by %c2_i32 dim 1 : vector<8x256xf32>, i32 -> vector<8x256xf32>
    %c2 = arith.constant 2 : index
    %11 = memref.load %arg1[%c2] : memref<16xf32, #tpu.memory_space<smem>>
    %12 = vector.extract_strided_slice %10 {offsets = [0, 128], sizes = [8, 128], strides = [1, 1]} : vector<8x256xf32> to vector<8x128xf32>
    %13 = vector.broadcast %11 : f32 to vector<8x128xf32>
    %14 = arith.mulf %13, %12 : vector<8x128xf32>
    %15 = arith.addf %9, %14 : vector<8x128xf32>
    %c3_i32 = arith.constant 3 : i32
    %16 = tpu.dynamic_rotate %2 by %c3_i32 dim 1 : vector<8x256xf32>, i32 -> vector<8x256xf32>
    %c3 = arith.constant 3 : index
    %17 = memref.load %arg1[%c3] : memref<16xf32, #tpu.memory_space<smem>>
    %18 = vector.extract_strided_slice %16 {offsets = [0, 128], sizes = [8, 128], strides = [1, 1]} : vector<8x256xf32> to vector<8x128xf32>
    %19 = vector.broadcast %17 : f32 to vector<8x128xf32>
    %20 = arith.mulf %19, %18 : vector<8x128xf32>
    %21 = arith.addf %15, %20 : vector<8x128xf32>
    %c4_i32 = arith.constant 4 : i32
    %22 = tpu.dynamic_rotate %2 by %c4_i32 dim 1 : vector<8x256xf32>, i32 -> vector<8x256xf32>
    %c4 = arith.constant 4 : index
    %23 = memref.load %arg1[%c4] : memref<16xf32, #tpu.memory_space<smem>>
    %24 = vector.extract_strided_slice %22 {offsets = [0, 128], sizes = [8, 128], strides = [1, 1]} : vector<8x256xf32> to vector<8x128xf32>
    %25 = vector.broadcast %23 : f32 to vector<8x128xf32>
    %26 = arith.mulf %25, %24 : vector<8x128xf32>
    %27 = arith.addf %21, %26 : vector<8x128xf32>
    %c5_i32 = arith.constant 5 : i32
    %28 = tpu.dynamic_rotate %2 by %c5_i32 dim 1 : vector<8x256xf32>, i32 -> vector<8x256xf32>
    %c5 = arith.constant 5 : index
    %29 = memref.load %arg1[%c5] : memref<16xf32, #tpu.memory_space<smem>>
    %30 = vector.extract_strided_slice %28 {offsets = [0, 128], sizes = [8, 128], strides = [1, 1]} : vector<8x256xf32> to vector<8x128xf32>
    %31 = vector.broadcast %29 : f32 to vector<8x128xf32>
    %32 = arith.mulf %31, %30 : vector<8x128xf32>
    %33 = arith.addf %27, %32 : vector<8x128xf32>
    %c6_i32 = arith.constant 6 : i32
    %34 = tpu.dynamic_rotate %2 by %c6_i32 dim 1 : vector<8x256xf32>, i32 -> vector<8x256xf32>
    %c6 = arith.constant 6 : index
    %35 = memref.load %arg1[%c6] : memref<16xf32, #tpu.memory_space<smem>>
    %36 = vector.extract_strided_slice %34 {offsets = [0, 128], sizes = [8, 128], strides = [1, 1]} : vector<8x256xf32> to vector<8x128xf32>
    %37 = vector.broadcast %35 : f32 to vector<8x128xf32>
    %38 = arith.mulf %37, %36 : vector<8x128xf32>
    %39 = arith.addf %33, %38 : vector<8x128xf32>
    %c7_i32 = arith.constant 7 : i32
    %40 = tpu.dynamic_rotate %2 by %c7_i32 dim 1 : vector<8x256xf32>, i32 -> vector<8x256xf32>
    %c7 = arith.constant 7 : index
    %41 = memref.load %arg1[%c7] : memref<16xf32, #tpu.memory_space<smem>>
    %42 = vector.extract_strided_slice %40 {offsets = [0, 128], sizes = [8, 128], strides = [1, 1]} : vector<8x256xf32> to vector<8x128xf32>
    %43 = vector.broadcast %41 : f32 to vector<8x128xf32>
    %44 = arith.mulf %43, %42 : vector<8x128xf32>
    %45 = arith.addf %39, %44 : vector<8x128xf32>
    %c8_i32 = arith.constant 8 : i32
    %46 = tpu.dynamic_rotate %2 by %c8_i32 dim 1 : vector<8x256xf32>, i32 -> vector<8x256xf32>
    %c8 = arith.constant 8 : index
    %47 = memref.load %arg1[%c8] : memref<16xf32, #tpu.memory_space<smem>>
    %48 = vector.extract_strided_slice %46 {offsets = [0, 128], sizes = [8, 128], strides = [1, 1]} : vector<8x256xf32> to vector<8x128xf32>
    %49 = vector.broadcast %47 : f32 to vector<8x128xf32>
    %50 = arith.mulf %49, %48 : vector<8x128xf32>
    %51 = arith.addf %45, %50 : vector<8x128xf32>
    %c9_i32 = arith.constant 9 : i32
    %52 = tpu.dynamic_rotate %2 by %c9_i32 dim 1 : vector<8x256xf32>, i32 -> vector<8x256xf32>
    %c9 = arith.constant 9 : index
    %53 = memref.load %arg1[%c9] : memref<16xf32, #tpu.memory_space<smem>>
    %54 = vector.extract_strided_slice %52 {offsets = [0, 128], sizes = [8, 128], strides = [1, 1]} : vector<8x256xf32> to vector<8x128xf32>
    %55 = vector.broadcast %53 : f32 to vector<8x128xf32>
    %56 = arith.mulf %55, %54 : vector<8x128xf32>
    %57 = arith.addf %51, %56 : vector<8x128xf32>
    %c10_i32 = arith.constant 10 : i32
    %58 = tpu.dynamic_rotate %2 by %c10_i32 dim 1 : vector<8x256xf32>, i32 -> vector<8x256xf32>
    %c10 = arith.constant 10 : index
    %59 = memref.load %arg1[%c10] : memref<16xf32, #tpu.memory_space<smem>>
    %60 = vector.extract_strided_slice %58 {offsets = [0, 128], sizes = [8, 128], strides = [1, 1]} : vector<8x256xf32> to vector<8x128xf32>
    %61 = vector.broadcast %59 : f32 to vector<8x128xf32>
    %62 = arith.mulf %61, %60 : vector<8x128xf32>
    %63 = arith.addf %57, %62 : vector<8x128xf32>
    %c11_i32 = arith.constant 11 : i32
    %64 = tpu.dynamic_rotate %2 by %c11_i32 dim 1 : vector<8x256xf32>, i32 -> vector<8x256xf32>
    %c11 = arith.constant 11 : index
    %65 = memref.load %arg1[%c11] : memref<16xf32, #tpu.memory_space<smem>>
    %66 = vector.extract_strided_slice %64 {offsets = [0, 128], sizes = [8, 128], strides = [1, 1]} : vector<8x256xf32> to vector<8x128xf32>
    %67 = vector.broadcast %65 : f32 to vector<8x128xf32>
    %68 = arith.mulf %67, %66 : vector<8x128xf32>
    %69 = arith.addf %63, %68 : vector<8x128xf32>
    %c12_i32 = arith.constant 12 : i32
    %70 = tpu.dynamic_rotate %2 by %c12_i32 dim 1 : vector<8x256xf32>, i32 -> vector<8x256xf32>
    %c12 = arith.constant 12 : index
    %71 = memref.load %arg1[%c12] : memref<16xf32, #tpu.memory_space<smem>>
    %72 = vector.extract_strided_slice %70 {offsets = [0, 128], sizes = [8, 128], strides = [1, 1]} : vector<8x256xf32> to vector<8x128xf32>
    %73 = vector.broadcast %71 : f32 to vector<8x128xf32>
    %74 = arith.mulf %73, %72 : vector<8x128xf32>
    %75 = arith.addf %69, %74 : vector<8x128xf32>
    %c13_i32 = arith.constant 13 : i32
    %76 = tpu.dynamic_rotate %2 by %c13_i32 dim 1 : vector<8x256xf32>, i32 -> vector<8x256xf32>
    %c13 = arith.constant 13 : index
    %77 = memref.load %arg1[%c13] : memref<16xf32, #tpu.memory_space<smem>>
    %78 = vector.extract_strided_slice %76 {offsets = [0, 128], sizes = [8, 128], strides = [1, 1]} : vector<8x256xf32> to vector<8x128xf32>
    %79 = vector.broadcast %77 : f32 to vector<8x128xf32>
    %80 = arith.mulf %79, %78 : vector<8x128xf32>
    %81 = arith.addf %75, %80 : vector<8x128xf32>
    %c14_i32 = arith.constant 14 : i32
    %82 = tpu.dynamic_rotate %2 by %c14_i32 dim 1 : vector<8x256xf32>, i32 -> vector<8x256xf32>
    %c14 = arith.constant 14 : index
    %83 = memref.load %arg1[%c14] : memref<16xf32, #tpu.memory_space<smem>>
    %84 = vector.extract_strided_slice %82 {offsets = [0, 128], sizes = [8, 128], strides = [1, 1]} : vector<8x256xf32> to vector<8x128xf32>
    %85 = vector.broadcast %83 : f32 to vector<8x128xf32>
    %86 = arith.mulf %85, %84 : vector<8x128xf32>
    %87 = arith.addf %81, %86 : vector<8x128xf32>
    %c15_i32 = arith.constant 15 : i32
    %88 = tpu.dynamic_rotate %2 by %c15_i32 dim 1 : vector<8x256xf32>, i32 -> vector<8x256xf32>
    %c15 = arith.constant 15 : index
    %89 = memref.load %arg1[%c15] : memref<16xf32, #tpu.memory_space<smem>>
    %90 = vector.extract_strided_slice %88 {offsets = [0, 128], sizes = [8, 128], strides = [1, 1]} : vector<8x256xf32> to vector<8x128xf32>
    %91 = vector.broadcast %89 : f32 to vector<8x128xf32>
    %92 = arith.mulf %91, %90 : vector<8x128xf32>
    %93 = arith.addf %87, %92 : vector<8x128xf32>
    %c0_3 = arith.constant 0 : index
    %c0_4 = arith.constant 0 : index
    %94 = vector.load %arg4[%c0_3, %c0_4] : memref<8x128xf32, #tpu.memory_space<vmem>>, vector<8x128xf32>
    tpu.vector_store %arg4[%c0_3, %c0_4], %93 {strides = array<i32>} : memref<8x128xf32, #tpu.memory_space<vmem>>, vector<8x128xf32>,
    return
  }
  func.func @transform_0(%arg0: i32) -> i32 {
    %c0_i32 = arith.constant 0 : i32
    %c0_i32_0 = arith.constant 0 : i32
    return %c0_i32 : i32
  }
  func.func @transform_1(%arg0: i32) -> (i32, i32) {
    %c0_i32 = arith.constant 0 : i32
    %c0_i32_0 = arith.constant 0 : i32
    return %arg0, %c0_i32 : i32, i32
  }
  func.func @transform_2(%arg0: i32) -> (i32, i32) {
    %c0_i32 = arith.constant 0 : i32
    %c0_i32_0 = arith.constant 0 : i32
    return %arg0, %c0_i32 : i32, i32
  }
  func.func @transform_3(%arg0: i32) -> (i32, i32) {
    %c0_i32 = arith.constant 0 : i32
    %c0_i32_0 = arith.constant 0 : i32
    return %arg0, %c0_i32 : i32, i32
  }
}

</mosaic_0001>

<bundles_post_ra>
// kernel: tpu_custom_call.1
= control target key start
LH: loop header
LB: loop body
LE: loop exit
PB: predicated region body
PF: predicated region fallthrough
CT: control target
= control target key end

     0   :  { %8 = vsyncpa [#allocation5], 0  ;;  %s1108_s0 = inlined_call_operand.hbm [shape: f32[16], index: 0, kind: input, shape index: {}]   ;;  %s1109_s1 = inlined_call_operand.hbm [shape: f32[16,128], index: 1, kind: input, shape index: {}]   ;;  %s1110_s2 = inlined_call_operand.hbm [shape: f32[16,128], index: 2, kind: input, shape index: {}]   ;;  %s1111_s3 = inlined_call_operand.hbm [shape: f32[16,128], index: 3, kind: output, shape index: {}]  }
   0x1   :  { %9 = vsyncpa [#allocation3], 0 }
   0x2   :  { %11 = vsyncpa [#allocation3 + $0x1], 0 }
   0x3   :  { %12 = vsyncpa [#allocation8], 0 }
   0x4   :  { %14 = vsyncpa [#allocation8 + $0x1], 0 }
   0x5   :  { %15 = vsyncpa [#allocation4], 0 }
   0x6   :  { %17 = vsyncpa [#allocation4 + $0x1], 0  ;;  %s806_s12 = smov 0   ;;  %s808_s13 = smov 0  }
   0x7   :  { %s810_s14 = smov 0   ;;  %s812_s15 = smov 0  }
   0x8 LB: > { %s827_s16 = sadd.s32 4294967295, %s765_s15   ;;  %s509_s17 = sadd.s32 4294967294, %s765_s15   ;;  %s765_s15 = sphi %s812_s15, %s1133_s15   ;;  %s761_s14 = sphi %s810_s14, %s1132_s14   ;;  %s757_s13 = sphi %s808_s13, %s1131_s13   ;;  %s753_s12 = sphi %s806_s12, %s1130_s12  }
   0x9   : > { %s831_s18 = sadd.s32 1, %s765_s15   ;;  %s51_s19 = sadd.s32 1, %s761_s14 }
   0xa   : > { %s48_s20 = ssub.s32 %s765_s15, %s831_s18  ;;  %p58_p0 = scmp.ne.s32.totalorder %s761_s14, %s757_s13 }
   0xb   : > { %p49_p1 = scmp.eq.s32.totalorder %s48_s20, 0  ;;  %p64_p2 = scmp.ne.s32.totalorder %s757_s13, %s753_s12 }
   0xc   : > { %p1112_p3 = scmp.eq.s32.totalorder %s827_s16, 0  ;;  %p114_p4 = scmp.eq.s32.totalorder %s827_s16, 1 }
   0xd   : > { %s843_s21 = scalar_select %p49_p1, %s761_s14, %s51_s19  }
   0xe   : > { %p847_p5 = por %p1112_p3, %p64_p2  ;;  %p854_p6 = por %p114_p4, %p58_p0 }
   0xf   : > { %p120_p7 = scmp.eq.s32.totalorder %s509_s17, 1  ;;  %p510_p8 = scmp.ge.s32.totalorder %s765_s15, 1 }
  0x10   : > { %s1116_s22 = scalar_select %p847_p5, 1, 0 }
  0x11   : > { %s1117_s23 = scalar_select %p854_p6, 1, 0 }
  0x12   : > { %p127_p9 = scmp.lt.s32.totalorder %s765_s15, 3  ;;  %p860_p10 = por %p120_p7, %p64_p2 }
  0x13   : > { %p59_p13 = scmp.eq.s32.totalorder %s765_s15, 0  ;;  %p567_p1 = scmp.lt.s32.totalorder %s765_s15, 2 }
  0x14   : > { %s1118_s24 = scalar_select %p860_p10, 1, 0 }
  0x15   : > { %p864_p11 = pnand %p510_p8, %p127_p9  ;;  %s874_s26 = sand.u32 1, %s761_s14  }
  0x16   : > { %p879_p3 = por %p59_p13, %p58_p0  ;;  %p1121_p2 = scmp.eq.s32.totalorder %s827_s16, 0 }
  0x17   : > { %s1119_s25 = scalar_select %p864_p11, 1, 0 }
  0x18   : > { %p551_p4 = pneg %p864_p11  ;;  %s513_s28 = sshll.u32 %s874_s26, 3 }
  0x19   : > { %s514_s29 = sshll.u32 %s765_s15, 7  ;;  %s618_s8 = scalar_lea.hbm %s1108_s0, 16 }
  0x1a   : > { %p552_p7 = pnand %p551_p4, %p1121_p2  ;;  %s892_s5 = scalar_lea.hbm %s1109_s1, %s514_s29 }
  0x1b   : > { %p619_p0 = scmp.ne.s32.totalorder %s1108_s0, %s618_s8  ;;  %p625_p4 = scmp.lt.u32.totalorder %s618_s8, %s1108_s0 }
  0x1c   : > { %p620_p8 = pneg %p552_p7 }
  0x1e   : > { %p621_p9 = pnand %p620_p8, %p619_p0 }
  0x20   : > { %p622_p13 = pneg %p621_p9 }
  0x22   : > { %p627_p2 = pnand %p625_p4, %p622_p13 }
  0x24   : > { %630 = shalt.err (!%p627_p2)
}
  0x25   : > { %s767_s19 = smov [#allocation2]   ;;  %s153_s4 = scalar_lea.vmem [#allocation6], %s513_s28 }
  0x26   : > { %554 = dma.hbm_to_smem (!%p552_p7), %s1108_s0, 16, %s767_s19, [#allocation5]  }
  0x27   : > { %s160_s6 = sshll.u32 %s153_s4, 4  ;;  %p912_p0 = pnand %p567_p1, %p879_p3  ;;  %s916_s6 = int_to_ptr.vmem [resolvable:$true] %s160_s6 }
  0x28   : > { %s150_s8 = scalar_lea.sflag [#allocation3], %s874_s26  ;;  %s631_s9 = scalar_lea.hbm %s892_s5, 128 }
  0x29   : > { %p632_p8 = scmp.ne.s32.totalorder %s892_s5, %s631_s9  ;;  %p633_p9 = pneg %p912_p0 }
  0x2a   : > { %s636_s11 = scalar_lea.hbm %s1109_s1, 256  ;;  %p637_p3 = scmp.lt.u32.totalorder %s892_s5, %s1109_s1 }
  0x2b   : > { %p634_p7 = pnand %p633_p9, %p632_p8  ;;  %p638_p1 = scmp.lt.u32.totalorder %s636_s11, %s631_s9 }
  0x2c   : > { %p640_p2 = scmp.lt.u32.totalorder %s631_s9, %s892_s5 }
  0x2d   : > { %p635_p13 = pneg %p634_p7  ;;  %p639_p4 = por %p638_p1, %p637_p3 }
  0x2f   : > { %p641_p12 = por %p640_p2, %p639_p4 }
  0x31   : > { %p642_p10 = pnand %p641_p12, %p635_p13 }
  0x33   : > { %645 = shalt.err (!%p642_p10)
}
  0x34   : > { %s646_s20 = scalar_lea.vmem %s916_s6, 128  ;;  %s768_s30 = smov [#allocation6]  }
  0x35   : > { %p647_p8 = scmp.ne.s32.totalorder %s916_s6, %s646_s20  ;;  %s651_s4 = sshll.u32 %s768_s30, 4  ;;  %s652_s4 = int_to_ptr.vmem [resolvable:$false] %s651_s4 }
  0x36   : > { %s653_s10 = scalar_lea.vmem %s652_s4, 256  ;;  %p654_p5 = scmp.lt.s32.totalorder %s916_s6, %s652_s4 }
  0x37   : > { %p649_p7 = pnand %p647_p8, %p633_p9  ;;  %p655_p3 = scmp.lt.s32.totalorder %s653_s10, %s646_s20 }
  0x39   : > { %p650_p6 = pneg %p649_p7  ;;  %p656_p1 = por %p655_p3, %p654_p5 }
  0x3b   : > { %p657_p4 = pnand %p656_p1, %p650_p6 }
  0x3d   : > { %660 = shalt.err (!%p657_p4)
}
  0x3e   : > { %558 = dma.hbm_to_vmem [thread:$0]  (!%p912_p0), %s892_s5, 128, %s916_s6, %s150_s8  }
  0x3f   : > { %s949_s11 = scalar_lea.hbm %s1110_s2, %s514_s29  ;;  %s171_s17 = scalar_lea.vmem [#allocation7], %s513_s28 }
  0x40   : > { %s178_s19 = sshll.u32 %s171_s17, 4  ;;  %s168_s20 = scalar_lea.sflag [#allocation8], %s874_s26  ;;  %s179_s19 = int_to_ptr.vmem [resolvable:$true] %s178_s19 }
  0x41   : > { %s661_s30 = scalar_lea.hbm %s949_s11, 128  ;;  %s666_s29 = scalar_lea.hbm %s1110_s2, 256 }
  0x42   : > { %p662_p5 = scmp.ne.s32.totalorder %s949_s11, %s661_s30  ;;  %p667_p12 = scmp.lt.u32.totalorder %s949_s11, %s1110_s2 }
  0x43   : > { %p668_p13 = scmp.lt.u32.totalorder %s666_s29, %s661_s30  ;;  %p670_p8 = scmp.lt.u32.totalorder %s661_s30, %s949_s11 }
  0x44   : > { %p664_p6 = pnand %p662_p5, %p633_p9 }
  0x45   : > { %p669_p2 = por %p668_p13, %p667_p12 }
  0x46   : > { %p665_p10 = pneg %p664_p6 }
  0x47   : > { %p671_p7 = por %p670_p8, %p669_p2 }
  0x49   : > { %p672_p3 = pnand %p671_p7, %p665_p10 }
  0x4b   : > { %675 = shalt.err (!%p672_p3)
}
  0x4c   : > { %s676_s26 = scalar_lea.vmem %s179_s19, 128  ;;  %s769_s28 = smov [#allocation7]  }
  0x4d   : > { %p677_p1 = scmp.ne.s32.totalorder %s179_s19, %s676_s26  ;;  %s681_s10 = sshll.u32 %s769_s28, 4  ;;  %s682_s10 = int_to_ptr.vmem [resolvable:$false] %s681_s10 }
  0x4e   : > { %s683_s9 = scalar_lea.vmem %s682_s10, 256  ;;  %p684_p6 = scmp.lt.s32.totalorder %s179_s19, %s682_s10 }
  0x4f   : > { %p679_p4 = pnand %p677_p1, %p633_p9  ;;  %p685_p11 = scmp.lt.s32.totalorder %s683_s9, %s676_s26 }
  0x51   : > { %p680_p5 = pneg %p679_p4  ;;  %p686_p12 = por %p685_p11, %p684_p6 }
  0x53   : > { %p687_p13 = pnand %p686_p12, %p680_p5 }
  0x55   : > { %690 = shalt.err (!%p687_p13)
}
  0x56   : > { %561 = dma.hbm_to_vmem [thread:$0]  (!%p912_p0), %s949_s11, 128, %s179_s19, %s168_s20  }
  0x57   : > { %p1123_p10 = scmp.ne.s32.totalorder %s1119_s25, 0 }
  0x58   : > { %p1124_p2 = scmp.eq.s32.totalorder (!%p1123_p10), %s827_s16, 0 }
  0x59   : > { %187 = sbr.rel (%p1123_p10) target bundleno = 296 (0x128), region = 32 }
  0x60   : > { %736 = dma.done.wait (%p1124_p2), [#allocation5], 16   ;;  %p1125_p9 = pmov %p1124_p2 }
  0x61   : > { %s980_s27 = sand.u32 1, %s757_s13   ;;  %p1126_p11 = scmp.ne.s32.totalorder %s1116_s22, 0 }
  0x62   : > { %738 = vsyncadd (%p1125_p9), [#allocation5], 4294967280  ;;  %s983_s17 = sshll.u32 %s980_s27, 3  ;;  %s194_s7 = scalar_lea.sflag [#allocation3], %s980_s27 }
  0x63   : > { %s197_s11 = scalar_lea.vmem [#allocation6], %s983_s17 }
  0x64   : > { %740 = dma.done.wait (%p1126_p11), %s194_s7, 128  }
  0x65   : > { %742 = vsyncadd (%p1126_p11), %s194_s7, 4294967168  ;;  %s203_s25 = scalar_lea.sflag [#allocation8], %s980_s27  ;;  %s206_s19 = scalar_lea.vmem [#allocation7], %s983_s17 }
  0x66   : > { %744 = dma.done.wait (%p1126_p11), %s203_s25, 128  }
  0x67   : > { %746 = vsyncadd (%p1126_p11), %s203_s25, 4294967168 }
  0x68   : > { %211 = sfence }
  0x69   : > { %v236_v0 = vld [vmem:[%s206_s19] sm:$0xff]  ;;  %s770_s20 = smov 2   ;;  %s771_s30 = smov 1   ;;  %v997_v1 = vld [vmem:[%s197_s11] sm:$0xff]  ;;  %v241_v8 = vlaneseq }
  0x6a   : > { %249 = vrot.lane.b32.xlu1 %v236_v0, %s770_s20  ;;  %237 = vrot.lane.b32.xlu0 %v236_v0, %s771_s30  ;;  %s772_s5 = smov 3   ;;  %s773_s6 = smov 4  }
  0x6b   : > { %s774_s22 = smov 5   ;;  %s775_s29 = smov 6   ;;  %v1014_v11 = vand.u32 127, %v241_v8 }
  0x6c   : > { %s776_s8 = smov 7   ;;  %s777_s4 = smov 8  }
  0x6d   : > { %s778_s26 = smov 9   ;;  %s779_s28 = smov 10   ;;  %vm243_vm0 = vcmp.lt.s32.totalorder %v1014_v11, 1  ;;  %vm253_vm1 = vcmp.lt.s32.totalorder %v1014_v11, 2  ;;  %vm263_vm2 = vcmp.lt.s32.totalorder %v1014_v11, 3  ;;  %vm273_vm3 = vcmp.lt.s32.totalorder %v1014_v11, 4 }
  0x6e   : > { %251 = vrot.lane.b32.xlu1 %v997_v1, %s770_s20  ;;  %239 = vrot.lane.b32.xlu0 %v997_v1, %s771_s30  ;;  %s780_s10 = smov 11   ;;  %s781_s9 = smov 12   ;;  %vm283_vm4 = vcmp.lt.s32.totalorder %v1014_v11, 5  ;;  %vm293_vm5 = vcmp.lt.s32.totalorder %v1014_v11, 6  ;;  %vm303_vm6 = vcmp.lt.s32.totalorder %v1014_v11, 7  ;;  %vm313_vm7 = vcmp.lt.s32.totalorder %v1014_v11, 8 }
  0x6f   : > { %s782_s7 = smov 13   ;;  %s783_s11 = smov 14   ;;  %vm323_vm8 = vcmp.lt.s32.totalorder %v1014_v11, 9  ;;  %vm333_vm9 = vcmp.lt.s32.totalorder %v1014_v11, 10  ;;  %vm343_vm10 = vcmp.lt.s32.totalorder %v1014_v11, 11  ;;  %vm353_vm11 = vcmp.lt.s32.totalorder %v1014_v11, 12 }
  0x70   : > { %s784_s25 = smov 15   ;;  %s522_s19 = sld [smem:[#allocation2 + $0x1]]  ;;  %vm363_vm12 = vcmp.lt.s32.totalorder %v1014_v11, 13  ;;  %vm373_vm13 = vcmp.lt.s32.totalorder %v1014_v11, 14  ;;  %vm383_vm14 = vcmp.lt.s32.totalorder %v1014_v11, 15 }
  0x71   : > { %s523_s20 = sld [smem:[#allocation2 + $0x2]]  ;;  %s524_s30 = sld [smem:[#allocation2 + $0x3]] }
  0x72   : > { %261 = vrot.lane.b32.xlu1 %v997_v1, %s772_s5  ;;  %259 = vrot.lane.b32.xlu0 %v236_v0, %s772_s5  ;;  %s525_s5 = sld [smem:[#allocation2 + $0x4]]  ;;  %p1127_p8 = scmp.ne.s32.totalorder %s1117_s23, 0 }
  0x76   : > { %271 = vrot.lane.b32.xlu1 %v997_v1, %s773_s6  ;;  %269 = vrot.lane.b32.xlu0 %v236_v0, %s773_s6  ;;  %v246_v16 = vstv %s522_s19  ;;  %s1018_s6 = sld [smem:[#allocation2 + $0x5]]  ;;  %s234_s19 = scalar_lea.vmem [#allocation9], %s983_s17 }
  0x77   : > { %v256_v21 = vstv %s523_s20  ;;  %v266_v26 = vstv %s524_s30  ;;  %s404_s20 = sshll.u32 %s234_s19, 4  ;;  %s1066_s20 = int_to_ptr.vmem [resolvable:$true] %s404_s20 }
  0x78   : > { %v276_v29 = vstv %s525_s5 }
  0x7a   : > { %281 = vrot.lane.b32.xlu1 %v997_v1, %s774_s22  ;;  %279 = vrot.lane.b32.xlu0 %v236_v0, %s774_s22  ;;  %s1021_s22 = sld [smem:[#allocation2 + $0x6]] }
  0x7c   : > { %v286_v35 = vstv %s1018_s6 }
  0x7e   : > { %291 = vrot.lane.b32.xlu1 %v997_v1, %s775_s29  ;;  %289 = vrot.lane.b32.xlu0 %v236_v0, %s775_s29  ;;  %s1025_s29 = sld [smem:[#allocation2 + $0x7]] }
  0x80   : > { %v296_v38 = vstv %s1021_s22  ;;  %s391_s22 = scalar_lea.sflag [#allocation4], %s980_s27 }
  0x82   : > { %301 = vrot.lane.b32.xlu1 %v997_v1, %s776_s8  ;;  %299 = vrot.lane.b32.xlu0 %v236_v0, %s776_s8  ;;  %s1028_s8 = sld [smem:[#allocation2 + $0x8]] }
  0x84   : > { %v306_v44 = vstv %s1025_s29  ;;  %s691_s29 = scalar_lea.vmem %s1066_s20, 128 }
  0x85   : > { %p692_p0 = scmp.ne.s32.totalorder %s1066_s20, %s691_s29 }
  0x86   : > { %311 = vrot.lane.b32.xlu1 %v997_v1, %s777_s4  ;;  %309 = vrot.lane.b32.xlu0 %v236_v0, %s777_s4  ;;  %s1032_s4 = sld [smem:[#allocation2 + $0x9]] }
  0x87   : > { %p693_p7 = pnand %p692_p0, %p1127_p8 }
  0x88   : > { %v316_v48 = vstv %s1028_s8 }
  0x89   : > { %p694_p3 = pneg %p693_p7 }
  0x8a   : > { %321 = vrot.lane.b32.xlu1 %v997_v1, %s778_s26  ;;  %319 = vrot.lane.b32.xlu0 %v236_v0, %s778_s26  ;;  %s1036_s26 = sld [smem:[#allocation2 + $0xa]] }
  0x8c   : > { %v326_v54 = vstv %s1032_s4 }
  0x8e   : > { %331 = vrot.lane.b32.xlu1 %v997_v1, %s779_s28  ;;  %329 = vrot.lane.b32.xlu0 %v236_v0, %s779_s28  ;;  %s1040_s28 = sld [smem:[#allocation2 + $0xb]] }
  0x90   : > { %v336_v58 = vstv %s1036_s26 }
  0x92   : > { %341 = vrot.lane.b32.xlu1 %v997_v1, %s780_s10  ;;  %339 = vrot.lane.b32.xlu0 %v236_v0, %s780_s10  ;;  %s1044_s10 = sld [smem:[#allocation2 + $0xc]] }
  0x96   : > { %351 = vrot.lane.b32.xlu1 %v997_v1, %s781_s9  ;;  %349 = vrot.lane.b32.xlu0 %v236_v0, %s781_s9  ;;  %s1048_s9 = sld [smem:[#allocation2 + $0xd]] }
  0x9a   : > { %361 = vrot.lane.b32.xlu1 %v997_v1, %s782_s7  ;;  %359 = vrot.lane.b32.xlu0 %v236_v0, %s782_s7  ;;  %s535_s7 = sld [smem:[#allocation2 + $0xe]] }
  0x9e   : > { %371 = vrot.lane.b32.xlu1 %v997_v1, %s783_s11  ;;  %369 = vrot.lane.b32.xlu0 %v236_v0, %s783_s11  ;;  %s536_s11 = sld [smem:[#allocation2 + $0xf]] }
  0xa2   : > { %381 = vrot.lane.b32.xlu1 %v997_v1, %s784_s25  ;;  %379 = vrot.lane.b32.xlu0 %v236_v0, %s784_s25  ;;  %v346_v0 = vstv %s1040_s28  ;;  %s538_s25 = sshll.u32 %s827_s16, 7  ;;  %s785_s16 = smov [#allocation9]  }
  0xa3   : > { %s1064_s6 = scalar_lea.hbm %s1111_s3, %s538_s25  ;;  %s695_s17 = sshll.u32 %s785_s16, 4  ;;  %s696_s17 = int_to_ptr.vmem [resolvable:$false] %s695_s17 }
  0xa4   : > { %s697_s8 = scalar_lea.vmem %s696_s17, 256  ;;  %p698_p1 = scmp.lt.s32.totalorder %s1066_s20, %s696_s17 }
  0xa5   : > { %p699_p4 = scmp.lt.s32.totalorder %s697_s8, %s691_s29 }
  0xa7   : > { %p700_p5 = por %p699_p4, %p698_p1 }
  0xa9   : > { %p701_p6 = pnand %p700_p5, %p694_p3 }
  0xdc   : > { %v250_v2 = vpop.permute.xlu1 %249  ;;  %v238_v3 = vpop.permute.xlu0 %237 }
  0xe0   : > { %v252_v4 = vpop.permute.xlu1 %251  ;;  %v240_v5 = vpop.permute.xlu0 %239 }
  0xe1   : > { %v244_v17 = vsel %vm243_vm0, %v238_v3, %v240_v5  ;;  %v254_v22 = vsel %vm253_vm1, %v250_v2, %v252_v4  ;;  %v356_v4 = vstv %s1044_s10 }
  0xe2   : > { %v247_v18 = vmul.f32 %v246_v16, %v244_v17  ;;  %v257_v28 = vmul.f32 %v256_v21, %v254_v22 }
  0xe4   : > { %v262_v6 = vpop.permute.xlu1 %261  ;;  %v260_v7 = vpop.permute.xlu0 %259  ;;  %v248_v23 = vadd.f32 %v247_v18, %v997_v1 }
  0xe5   : > { %v264_v27 = vsel %vm263_vm2, %v260_v7, %v262_v6 }
  0xe6   : > { %v258_v31 = vadd.f32 %v257_v28, %v248_v23  ;;  %v267_v32 = vmul.f32 %v266_v26, %v264_v27  ;;  %v386_v23 = vstv %s536_s11 }
  0xe8   : > { %v272_v9 = vpop.permute.xlu1 %271  ;;  %v270_v10 = vpop.permute.xlu0 %269  ;;  %v268_v40 = vadd.f32 %v267_v32, %v258_v31 }
  0xe9   : > { %v274_v30 = vsel %vm273_vm3, %v270_v10, %v272_v9  ;;  %v366_v10 = vstv %s1048_s9 }
  0xea   : > { %v277_v37 = vmul.f32 %v276_v29, %v274_v30 }
  0xec   : > { %v282_v12 = vpop.permute.xlu1 %281  ;;  %v280_v13 = vpop.permute.xlu0 %279  ;;  %v278_v46 = vadd.f32 %v277_v37, %v268_v40 }
  0xed   : > { %v284_v36 = vsel %vm283_vm4, %v280_v13, %v282_v12 }
  0xee   : > { %v287_v41 = vmul.f32 %v286_v35, %v284_v36 }
  0xf0   : > { %v292_v14 = vpop.permute.xlu1 %291  ;;  %v290_v15 = vpop.permute.xlu0 %289  ;;  %v288_v50 = vadd.f32 %v287_v41, %v278_v46 }
  0xf1   : > { %v294_v39 = vsel %vm293_vm5, %v290_v15, %v292_v14  ;;  %v376_v15 = vstv %s535_s7 }
  0xf2   : > { %v297_v47 = vmul.f32 %v296_v38, %v294_v39 }
  0xf4   : > { %v302_v19 = vpop.permute.xlu1 %301  ;;  %v300_v20 = vpop.permute.xlu0 %299  ;;  %v298_v56 = vadd.f32 %v297_v47, %v288_v50 }
  0xf5   : > { %v304_v45 = vsel %vm303_vm6, %v300_v20, %v302_v19 }
  0xf6   : > { %v307_v51 = vmul.f32 %v306_v44, %v304_v45 }
  0xf8   : > { %v312_v24 = vpop.permute.xlu1 %311  ;;  %v310_v25 = vpop.permute.xlu0 %309  ;;  %v308_v60 = vadd.f32 %v307_v51, %v298_v56 }
  0xf9   : > { %v314_v49 = vsel %vm313_vm7, %v310_v25, %v312_v24 }
  0xfa   : > { %v317_v57 = vmul.f32 %v316_v48, %v314_v49 }
  0xfc   : > { %v322_v33 = vpop.permute.xlu1 %321  ;;  %v320_v34 = vpop.permute.xlu0 %319  ;;  %v318_v2 = vadd.f32 %v317_v57, %v308_v60 }
  0xfd   : > { %v324_v55 = vsel %vm323_vm8, %v320_v34, %v322_v33 }
  0xfe   : > { %v327_v61 = vmul.f32 %v326_v54, %v324_v55 }
 0x100   : > { %v332_v42 = vpop.permute.xlu1 %331  ;;  %v330_v43 = vpop.permute.xlu0 %329  ;;  %v328_v6 = vadd.f32 %v327_v61, %v318_v2 }
 0x101   : > { %v334_v59 = vsel %vm333_vm9, %v330_v43, %v332_v42 }
 0x102   : > { %v337_v3 = vmul.f32 %v336_v58, %v334_v59 }
 0x104   : > { %v342_v52 = vpop.permute.xlu1 %341  ;;  %v340_v53 = vpop.permute.xlu0 %339  ;;  %v338_v13 = vadd.f32 %v337_v3, %v328_v6 }
 0x105   : > { %v344_v1 = vsel %vm343_vm10, %v340_v53, %v342_v52 }
 0x106   : > { %v347_v7 = vmul.f32 %v346_v0, %v344_v1 }
 0x108   : > { %v352_v62 = vpop.permute.xlu1 %351  ;;  %v350_v63 = vpop.permute.xlu0 %349  ;;  %v348_v16 = vadd.f32 %v347_v7, %v338_v13 }
 0x109   : > { %v354_v5 = vsel %vm353_vm11, %v350_v63, %v352_v62 }
 0x10a   : > { %v357_v14 = vmul.f32 %v356_v4, %v354_v5 }
 0x10c   : > { %v362_v8 = vpop.permute.xlu1 %361  ;;  %v360_v9 = vpop.permute.xlu0 %359  ;;  %v358_v21 = vadd.f32 %v357_v14, %v348_v16 }
 0x10d   : > { %v364_v12 = vsel %vm363_vm12, %v360_v9, %v362_v8 }
 0x10e   : > { %v367_v17 = vmul.f32 %v366_v10, %v364_v12 }
 0x110   : > { %v372_v18 = vpop.permute.xlu1 %371  ;;  %v370_v19 = vpop.permute.xlu0 %369  ;;  %v368_v24 = vadd.f32 %v367_v17, %v358_v21 }
 0x111   : > { %v374_v20 = vsel %vm373_vm13, %v370_v19, %v372_v18 }
 0x112   : > { %v377_v22 = vmul.f32 %v376_v15, %v374_v20 }
 0x114   : > { %v382_v25 = vpop.permute.xlu1 %381  ;;  %v380_v26 = vpop.permute.xlu0 %379  ;;  %v378_v28 = vadd.f32 %v377_v22, %v368_v24 }
 0x115   : > { %v384_v27 = vsel %vm383_vm14, %v380_v26, %v382_v25 }
 0x116   : > { %v387_v29 = vmul.f32 %v386_v23, %v384_v27 }
 0x118   : > { %v388_v30 = vadd.f32 %v387_v29, %v378_v28 }
 0x11a   : > { %389 = vst [vmem:[%s234_s19] sm:$0xff] %v388_v30 }
 0x11b   : > { %704 = shalt.err (!%p701_p6)
}
 0x11c   : > { %s705_s27 = scalar_lea.hbm %s1064_s6, 128  ;;  %s709_s28 = scalar_lea.hbm %s1111_s3, 256 }
 0x11d   : > { %p706_p12 = scmp.ne.s32.totalorder %s1064_s6, %s705_s27  ;;  %p710_p2 = scmp.lt.u32.totalorder %s1064_s6, %s1111_s3 }
 0x11e   : > { %p711_p9 = scmp.lt.u32.totalorder %s709_s28, %s705_s27  ;;  %p713_p0 = scmp.lt.u32.totalorder %s705_s27, %s1064_s6 }
 0x11f   : > { %p707_p13 = pnand %p706_p12, %p1127_p8 }
 0x120   : > { %p712_p11 = por %p711_p9, %p710_p2 }
 0x121   : > { %p708_p10 = pneg %p707_p13 }
 0x122   : > { %p714_p7 = por %p713_p0, %p712_p11 }
 0x124   : > { %p715_p3 = pnand %p714_p7, %p708_p10 }
 0x126   : > { %718 = shalt.err (!%p715_p3)
}
 0x127   : > { %549 = dma.vmem_to_hbm [thread:$0]  (%p1127_p8), %s1066_s20, 128, %s1064_s6, %s391_s22  }
 0x128 PF: > { %s416_s7 = sand.u32 1, %s753_s12   ;;  %p1128_p1 = scmp.ne.s32.totalorder %s1118_s24, 0 }
 0x129   : > { %p1129_p4 = scmp.ge.s32.totalorder %s765_s15, 2  ;;  %s417_s11 = scalar_lea.sflag [#allocation4], %s416_s7 }
 0x12b   : > { %p563_p5 = pnand %p1129_p4, %p1128_p1 }
 0x12d   : > { %748 = dma.done.wait (!%p563_p5), %s417_s11, 128  }
 0x12e   : > { %750 = vsyncadd (!%p563_p5), %s417_s11, 4294967168  ;;  %p20_p6 = scmp.ge.s32.totalorder %s831_s18, 4   ;;  %s1130_s12 = smov %s757_s13 }
 0x12f   : > { %s1131_s13 = smov %s761_s14  ;;  %s1132_s14 = smov %s843_s21 }
 0x130   : > { %s1133_s15 = smov %s831_s18  ;;  %22 = sbr.rel (!%p20_p6) target bundleno = 8 (0x8), region = 95 }
 0x137   :  { %422 = vsyncpa [#allocation3], 1 }
 0x138   :  { %424 = vsyncpa [#allocation3 + $0x1], 1 }
 0x139   :  { %425 = vsyncpa [#allocation8], 1 }
 0x13a   :  { %427 = vsyncpa [#allocation8 + $0x1], 1 }
 0x13b   :  { %428 = vsyncpa [#allocation4], 1 }
 0x13c   :  { %430 = vsyncpa [#allocation4 + $0x1], 1 }
 0x13d   :  { %431 = vsyncpa [#allocation5], 1 }
 0x13e   :  { %433 = vsyncpa [#allocation5 + $0x1], 1 }

</bundles_post_ra>
